<compile_context>
chip_gen: v7x
topology: tpu7x:2x2x1
jax: 0.10.0
libtpu: 0.0.40
codegen_flags: <defaults>
</compile_context>

<pallas_src>
import functools

import jax
import jax.numpy as jnp
from jax.experimental import pallas as pl
from jax.experimental.pallas import tpu as pltpu


def cs_se_kernel(x_ref, w1t_ref, b1_ref, w2_ref, b2_ref, ws_ref, bs_ref, o_ref,
                 *, inv_hw):
    """One grid step processes a (Bt, C, HW) block of images.

    x_ref   : (Bt, C, HW) f32   input block
    w1t_ref : (1, C, C_red) f32  fc1 weight, transposed  (W1[r, c] -> [0, c, r])
    b1_ref  : (1, 1, C_red) f32  fc1 bias
    w2_ref  : (1, C, C_red) f32  fc2 weight (natural layout W2[c, r])
    b2_ref  : (1, C, 1)     f32  fc2 bias
    ws_ref  : (1, C, 1)     f32  1x1-conv weight
    bs_ref  : (1,)          f32  1x1-conv bias (SMEM scalar)
    o_ref   : (Bt, C, HW)   f32  output block
    """
    x = x_ref[...]                                               # (Bt, C, HW)

    # ---- channel squeeze: spatial mean over the true HW extent -------------
    sq = jnp.sum(x, axis=2, keepdims=True) * inv_hw              # (Bt, C, 1)

    # ---- channel excitation (tiny MLP on VPU/XLU, layout-preserving) -------
    # h[b, r] = relu( sum_c W1[r, c] * sq[b, c] + b1[r] )
    h = jnp.sum(sq * w1t_ref[...], axis=1, keepdims=True) + b1_ref[...]
    h = jnp.maximum(h, 0.0)                                      # (Bt, 1, C_red)
    # c_logit[b, c] = sum_r W2[c, r] * h[b, r] + b2[c]
    c_logit = jnp.sum(h * w2_ref[...], axis=2, keepdims=True) + b2_ref[...]
    c_gate = jax.nn.sigmoid(c_logit)                             # (Bt, C, 1)

    # ---- spatial excitation: 1x1 conv over channels (VPU mul + sublane sum) -
    s_logit = jnp.sum(x * ws_ref[...], axis=1, keepdims=True) + bs_ref[0]
    s_gate = jax.nn.sigmoid(s_logit)                             # (Bt, 1, HW)

    # ---- combine: max(cSE, sSE) --------------------------------------------
    o_ref[...] = jnp.maximum(x * c_gate, x * s_gate).astype(o_ref.dtype)


def channel_spatial_se(x, params, *, target_block_bytes=4 << 20):
    """x: (B, C, H, W) float32. params: fc1/fc2/conv weights (PyTorch layout)."""
    B, C, H, W = x.shape
    HW = H * W
    itemsize = x.dtype.itemsize

    # VMEM footprint of one image slab accounts for sublane/lane padding
    # (C rounded to 8 sublanes, HW rounded to 128 lanes).
    Cp = ((C + 7) // 8) * 8
    HWl = ((HW + 127) // 128) * 128
    per_image_vmem = Cp * HWl * itemsize

    # Batch tile: ~target_block_bytes per block, but keep >= 2 grid steps when
    # B >= 2 so v7x's two TensorCores both get work on the "parallel" axis.
    Bt = max(1, min(B, target_block_bytes // per_image_vmem))
    if B >= 2:
        Bt = max(1, min(Bt, (B + 1) // 2))
    n_blocks = pl.cdiv(B, Bt)

    x_flat = x.reshape(B, C, HW)                       # free metadata reshape

    C_red = params["fc1_w"].shape[0]
    w1t = params["fc1_w"].T.reshape(1, C, C_red)       # (1, C, C_red)
    b1 = params["fc1_b"].reshape(1, 1, C_red)          # (1, 1, C_red)
    w2 = params["fc2_w"].reshape(1, C, C_red)          # (1, C, C_red)
    b2 = params["fc2_b"].reshape(1, C, 1)              # (1, C, 1)
    ws = params["conv_w"].reshape(1, C, 1)             # (1, C, 1)
    bs = params["conv_b"].reshape(1)                   # (1,)  -> SMEM scalar

    # ~5x block (double-buffered in+out + elementwise headroom) + weights +
    # slack; clamp to stay inside v7x's 64 MiB physical VMEM with margin.
    block_bytes = Bt * per_image_vmem
    weight_bytes = (w1t.size + b1.size + w2.size + b2.size + ws.size) * itemsize
    vmem_limit = int(min(max(5 * block_bytes + weight_bytes + (4 << 20),
                             16 << 20),
                         48 << 20))

    full = lambda shape: pl.BlockSpec(shape, lambda b: (0,) * len(shape))
    kernel = functools.partial(cs_se_kernel, inv_hw=1.0 / HW)

    cost = pl.CostEstimate(
        flops=int(7 * B * C * HW),
        transcendentals=int(B * (C + HW)),
        bytes_accessed=int(2 * B * C * HW * itemsize),
    )

    out = pl.pallas_call(
        kernel,
        out_shape=jax.ShapeDtypeStruct((B, C, HW), x.dtype),
        grid_spec=pltpu.PrefetchScalarGridSpec(
            num_scalar_prefetch=0,
            grid=(n_blocks,),
            in_specs=[
                pl.BlockSpec((Bt, C, HW), lambda b: (b, 0, 0)),     # x
                full((1, C, C_red)),                                # fc1 W^T
                full((1, 1, C_red)),                                # fc1 b
                full((1, C, C_red)),                                # fc2 W
                full((1, C, 1)),                                    # fc2 b
                full((1, C, 1)),                                    # conv W
                pl.BlockSpec(memory_space=pltpu.MemorySpace.SMEM),  # conv b
            ],
            out_specs=pl.BlockSpec((Bt, C, HW), lambda b: (b, 0, 0)),
        ),
        compiler_params=pltpu.CompilerParams(
            dimension_semantics=("parallel",),
            vmem_limit_bytes=vmem_limit,
        ),
        cost_estimate=cost,
    )(x_flat, w1t, b1, w2, b2, ws, bs)

    return out.reshape(B, C, H, W)


def reference(x, params):
    """Pure-JAX reference mirroring the PyTorch forward exactly."""
    B, C, H, W = x.shape
    squeeze = x.reshape(B, C, -1).mean(axis=2)                           # (B, C)
    h = jax.nn.relu(squeeze @ params["fc1_w"].T + params["fc1_b"])       # (B, C_red)
    cg = jax.nn.sigmoid(h @ params["fc2_w"].T + params["fc2_b"])         # (B, C)
    cse = x * cg[:, :, None, None]
    s = jnp.einsum("bchw,c->bhw", x, params["conv_w"].reshape(-1)) + params["conv_b"][0]
    sse = x * jax.nn.sigmoid(s)[:, None, :, :]
    return jnp.maximum(cse, sse)


if __name__ == "__main__":
    B, C, H, W = 2, 4, 16, 16
    reduction_ratio = 2
    C_red = C // reduction_ratio

    key = jax.random.PRNGKey(0)
    ks = jax.random.split(key, 7)
    params = {
        "fc1_w": jax.random.normal(ks[0], (C_red, C), jnp.float32) * 0.5,
        "fc1_b": jax.random.normal(ks[1], (C_red,), jnp.float32) * 0.1,
        "fc2_w": jax.random.normal(ks[2], (C, C_red), jnp.float32) * 0.5,
        "fc2_b": jax.random.normal(ks[3], (C,), jnp.float32) * 0.1,
        "conv_w": jax.random.normal(ks[4], (1, C, 1, 1), jnp.float32) * 0.5,
        "conv_b": jax.random.normal(ks[5], (1,), jnp.float32) * 0.1,
    }
    x = jax.random.normal(ks[6], (B, C, H, W), jnp.float32)

    out = channel_spatial_se(x, params)
    out = jax.block_until_ready(out)

    ref = reference(x, params)
    assert out.shape == (B, C, H, W)
    assert jnp.allclose(out, ref, atol=1e-5, rtol=1e-5), "mismatch vs reference"

    print("KERNEL_OK")
</pallas_src>

<mosaic_0001>
module attributes {stable_mosaic.version = 11 : i64} {
  func.func @cs_se_kernel(%arg0: i32, %arg1: memref<1x4x256xf32, #tpu.memory_space<vmem>>, %arg2: memref<1x4x2xf32, #tpu.memory_space<vmem>>, %arg3: memref<1x1x2xf32, #tpu.memory_space<vmem>>, %arg4: memref<1x4x2xf32, #tpu.memory_space<vmem>>, %arg5: memref<1x4x1xf32, #tpu.memory_space<vmem>>, %arg6: memref<1x4x1xf32, #tpu.memory_space<vmem>>, %arg7: memref<1xf32, #tpu.memory_space<smem>>, %arg8: memref<1x4x256xf32, #tpu.memory_space<vmem>>) attributes {dimension_semantics = [#tpu.dimension_semantics<parallel>], iteration_bounds = array<i64: 2>, scalar_prefetch = 0 : i64, scratch_operands = 0 : i64, tpu.core_type = #tpu.core_type<tc>, window_params = [{transform_indices = @transform_0, window_bounds = array<i64: 1, 4, 256>}, {pipeline_mode = #tpu.pipeline_mode<synchronous>, transform_indices = @transform_1, window_bounds = array<i64: 1, 4, 2>}, {pipeline_mode = #tpu.pipeline_mode<synchronous>, transform_indices = @transform_2, window_bounds = array<i64: 1, 1, 2>}, {pipeline_mode = #tpu.pipeline_mode<synchronous>, transform_indices = @transform_3, window_bounds = array<i64: 1, 4, 2>}, {pipeline_mode = #tpu.pipeline_mode<synchronous>, transform_indices = @transform_4, window_bounds = array<i64: 1, 4, 1>}, {pipeline_mode = #tpu.pipeline_mode<synchronous>, transform_indices = @transform_5, window_bounds = array<i64: 1, 4, 1>}, {transform_indices = @transform_6, window_bounds = array<i64: 1>}, {transform_indices = @transform_7, window_bounds = array<i64: 1, 4, 256>}]} {
    %c0 = arith.constant 0 : index
    %c0_0 = arith.constant 0 : index
    %c0_1 = arith.constant 0 : index
    %0 = vector.load %arg1[%c0, %c0_0, %c0_1] : memref<1x4x256xf32, #tpu.memory_space<vmem>>, vector<1x4x256xf32>
    %cst = arith.constant dense<0.000000e+00> : vector<1x4xf32>
    %1 = vector.multi_reduction <add>, %0, %cst [2] : vector<1x4x256xf32> to vector<1x4xf32>
    %2 = vector.shape_cast %1 : vector<1x4xf32> to vector<1x4x1xf32>
    %cst_2 = arith.constant 3.906250e-03 : f32
    %3 = vector.broadcast %cst_2 : f32 to vector<1x4x1xf32>
    %4 = arith.mulf %2, %3 : vector<1x4x1xf32>
    %c0_3 = arith.constant 0 : index
    %c0_4 = arith.constant 0 : index
    %c0_5 = arith.constant 0 : index
    %5 = vector.load %arg2[%c0_3, %c0_4, %c0_5] : memref<1x4x2xf32, #tpu.memory_space<vmem>>, vector<1x4x2xf32>
    %6 = vector.broadcast %4 : vector<1x4x1xf32> to vector<1x4x2xf32>
    %7 = arith.mulf %6, %5 : vector<1x4x2xf32>
    %cst_6 = arith.constant dense<0.000000e+00> : vector<1x2xf32>
    %8 = vector.multi_reduction <add>, %7, %cst_6 [1] : vector<1x4x2xf32> to vector<1x2xf32>
    %9 = vector.shape_cast %8 : vector<1x2xf32> to vector<1x1x2xf32>
    %c0_7 = arith.constant 0 : index
    %c0_8 = arith.constant 0 : index
    %c0_9 = arith.constant 0 : index
    %10 = vector.load %arg3[%c0_7, %c0_8, %c0_9] : memref<1x1x2xf32, #tpu.memory_space<vmem>>, vector<1x1x2xf32>
    %11 = arith.addf %9, %10 : vector<1x1x2xf32>
    %cst_10 = arith.constant 0.000000e+00 : f32
    %12 = vector.broadcast %cst_10 : f32 to vector<1x1x2xf32>
    %13 = arith.maximumf %11, %12 : vector<1x1x2xf32>
    %c0_11 = arith.constant 0 : index
    %c0_12 = arith.constant 0 : index
    %c0_13 = arith.constant 0 : index
    %14 = vector.load %arg4[%c0_11, %c0_12, %c0_13] : memref<1x4x2xf32, #tpu.memory_space<vmem>>, vector<1x4x2xf32>
    %15 = vector.broadcast %13 : vector<1x1x2xf32> to vector<1x4x2xf32>
    %16 = arith.mulf %15, %14 : vector<1x4x2xf32>
    %cst_14 = arith.constant dense<0.000000e+00> : vector<1x4xf32>
    %17 = vector.multi_reduction <add>, %16, %cst_14 [2] : vector<1x4x2xf32> to vector<1x4xf32>
    %18 = vector.shape_cast %17 : vector<1x4xf32> to vector<1x4x1xf32>
    %c0_15 = arith.constant 0 : index
    %c0_16 = arith.constant 0 : index
    %c0_17 = arith.constant 0 : index
    %19 = vector.load %arg5[%c0_15, %c0_16, %c0_17] : memref<1x4x1xf32, #tpu.memory_space<vmem>>, vector<1x4x1xf32>
    %20 = arith.addf %18, %19 : vector<1x4x1xf32>
    %21 = arith.negf %20 : vector<1x4x1xf32>
    %22 = math.exp %21 : vector<1x4x1xf32>
    %cst_18 = arith.constant 1.000000e+00 : f32
    %23 = vector.broadcast %cst_18 : f32 to vector<1x4x1xf32>
    %24 = arith.addf %23, %22 : vector<1x4x1xf32>
    %25 = arith.divf %23, %24 : vector<1x4x1xf32>
    %c0_19 = arith.constant 0 : index
    %c0_20 = arith.constant 0 : index
    %c0_21 = arith.constant 0 : index
    %26 = vector.load %arg6[%c0_19, %c0_20, %c0_21] : memref<1x4x1xf32, #tpu.memory_space<vmem>>, vector<1x4x1xf32>
    %27 = vector.broadcast %26 : vector<1x4x1xf32> to vector<1x4x256xf32>
    %28 = arith.mulf %0, %27 : vector<1x4x256xf32>
    %cst_22 = arith.constant dense<0.000000e+00> : vector<1x256xf32>
    %29 = vector.multi_reduction <add>, %28, %cst_22 [1] : vector<1x4x256xf32> to vector<1x256xf32>
    %30 = vector.shape_cast %29 : vector<1x256xf32> to vector<1x1x256xf32>
    %c0_23 = arith.constant 0 : index
    %31 = memref.load %arg7[%c0_23] : memref<1xf32, #tpu.memory_space<smem>>
    %32 = vector.broadcast %31 : f32 to vector<1x1x256xf32>
    %33 = arith.addf %30, %32 : vector<1x1x256xf32>
    %34 = arith.negf %33 : vector<1x1x256xf32>
    %35 = math.exp %34 : vector<1x1x256xf32>
    %cst_24 = arith.constant 1.000000e+00 : f32
    %36 = vector.broadcast %cst_24 : f32 to vector<1x1x256xf32>
    %37 = arith.addf %36, %35 : vector<1x1x256xf32>
    %38 = arith.divf %36, %37 : vector<1x1x256xf32>
    %39 = vector.broadcast %25 : vector<1x4x1xf32> to vector<1x4x256xf32>
    %40 = arith.mulf %0, %39 : vector<1x4x256xf32>
    %41 = vector.broadcast %38 : vector<1x1x256xf32> to vector<1x4x256xf32>
    %42 = arith.mulf %0, %41 : vector<1x4x256xf32>
    %43 = arith.maximumf %40, %42 : vector<1x4x256xf32>
    %c0_25 = arith.constant 0 : index
    %c0_26 = arith.constant 0 : index
    %c0_27 = arith.constant 0 : index
    %44 = vector.load %arg8[%c0_25, %c0_26, %c0_27] : memref<1x4x256xf32, #tpu.memory_space<vmem>>, vector<1x4x256xf32>
    tpu.vector_store %arg8[%c0_25, %c0_26, %c0_27], %43 {strides = array<i32>} : memref<1x4x256xf32, #tpu.memory_space<vmem>>, vector<1x4x256xf32>,
    return
  }
  func.func @transform_0(%arg0: i32) -> (i32, i32, i32) {
    %c0_i32 = arith.constant 0 : i32
    %c0_i32_0 = arith.constant 0 : i32
    %c0_i32_1 = arith.constant 0 : i32
    return %arg0, %c0_i32, %c0_i32_0 : i32, i32, i32
  }
  func.func @transform_1(%arg0: i32) -> (i32, i32, i32) {
    %c0_i32 = arith.constant 0 : i32
    %c0_i32_0 = arith.constant 0 : i32
    %c0_i32_1 = arith.constant 0 : i32
    %c0_i32_2 = arith.constant 0 : i32
    return %c0_i32, %c0_i32_0, %c0_i32_1 : i32, i32, i32
  }
  func.func @transform_2(%arg0: i32) -> (i32, i32, i32) {
    %c0_i32 = arith.constant 0 : i32
    %c0_i32_0 = arith.constant 0 : i32
    %c0_i32_1 = arith.constant 0 : i32
    %c0_i32_2 = arith.constant 0 : i32
    return %c0_i32, %c0_i32_0, %c0_i32_1 : i32, i32, i32
  }
  func.func @transform_3(%arg0: i32) -> (i32, i32, i32) {
    %c0_i32 = arith.constant 0 : i32
    %c0_i32_0 = arith.constant 0 : i32
    %c0_i32_1 = arith.constant 0 : i32
    %c0_i32_2 = arith.constant 0 : i32
    return %c0_i32, %c0_i32_0, %c0_i32_1 : i32, i32, i32
  }
  func.func @transform_4(%arg0: i32) -> (i32, i32, i32) {
    %c0_i32 = arith.constant 0 : i32
    %c0_i32_0 = arith.constant 0 : i32
    %c0_i32_1 = arith.constant 0 : i32
    %c0_i32_2 = arith.constant 0 : i32
    return %c0_i32, %c0_i32_0, %c0_i32_1 : i32, i32, i32
  }
  func.func @transform_5(%arg0: i32) -> (i32, i32, i32) {
    %c0_i32 = arith.constant 0 : i32
    %c0_i32_0 = arith.constant 0 : i32
    %c0_i32_1 = arith.constant 0 : i32
    %c0_i32_2 = arith.constant 0 : i32
    return %c0_i32, %c0_i32_0, %c0_i32_1 : i32, i32, i32
  }
  func.func @transform_6(%arg0: i32) -> i32 {
    %c0_i32 = arith.constant 0 : i32
    %c0_i32_0 = arith.constant 0 : i32
    return %c0_i32 : i32
  }
  func.func @transform_7(%arg0: i32) -> (i32, i32, i32) {
    %c0_i32 = arith.constant 0 : i32
    %c0_i32_0 = arith.constant 0 : i32
    %c0_i32_1 = arith.constant 0 : i32
    return %arg0, %c0_i32, %c0_i32_0 : i32, i32, i32
  }
}

</mosaic_0001>

<bundles_post_ra>
// kernel: tpu_custom_call.1
= control target key start
LH: loop header
LB: loop body
LE: loop exit
PB: predicated region body
PF: predicated region fallthrough
CT: control target
= control target key end

     0   :  { %s772_s0 = inlined_call_operand.vmem [shape: f32[2,4,256], index: 0, kind: input, shape index: {}]   ;;  %s773_s1 = inlined_call_operand.vmem [shape: f32[1,4,2], index: 1, kind: input, shape index: {}]   ;;  %s774_s2 = inlined_call_operand.vmem [shape: f32[1,1,2], index: 2, kind: input, shape index: {}]   ;;  %s775_s3 = inlined_call_operand.vmem [shape: f32[1,4,2], index: 3, kind: input, shape index: {}]   ;;  %s776_s4 = inlined_call_operand.vmem [shape: f32[1,4,1], index: 4, kind: input, shape index: {}]   ;;  %s777_s5 = inlined_call_operand.vmem [shape: f32[1,4,1], index: 5, kind: input, shape index: {}]   ;;  %s778_s6 = inlined_call_operand.<no memory space> [shape: f32[1], index: 6, kind: input, shape index: {}]   ;;  %s779_s7 = inlined_call_operand.hbm [shape: f32[2,4,256], index: 7, kind: output, shape index: {}]  }
   0x1   :  { %12 = sst [smem:[#allocation2]] %s778_s6 }
   0x2   :  { %13 = vsyncpa [#allocation4], 0 }
   0x3   :  { %15 = vsyncpa [#allocation4 + $0x1], 0  ;;  %s643_s26 = smov 0   ;;  %s645_s27 = smov 0  }
   0x4   :  { %s647_s28 = smov 0   ;;  %s649_s29 = smov 0  }
   0x5 LB: > { %s664_s6 = sadd.s32 4294967295, %s595_s29   ;;  %s460_s30 = sadd.s32 4294967294, %s595_s29   ;;  %s595_s29 = sphi %s649_s29, %s785_s29   ;;  %s591_s28 = sphi %s647_s28, %s784_s28   ;;  %s587_s27 = sphi %s645_s27, %s783_s27   ;;  %s583_s26 = sphi %s643_s26, %s782_s26  }
   0x6   : > { %s668_s8 = sadd.s32 1, %s595_s29   ;;  %s180_s9 = sadd.s32 1, %s591_s28 }
   0x7   : > { %s177_s10 = ssub.s32 %s595_s29, %s668_s8  ;;  %p190_p0 = scmp.ne.s32.totalorder %s591_s28, %s587_s27 }
   0x8   : > { %p178_p1 = scmp.eq.s32.totalorder %s177_s10, 0  ;;  %p191_p2 = scmp.eq.s32.totalorder %s664_s6, 1 }
   0x9   : > { %p196_p3 = scmp.ne.s32.totalorder %s587_s27, %s583_s26  ;;  %p197_p4 = scmp.eq.s32.totalorder %s460_s30, 1 }
   0xa   : > { %s679_s11 = scalar_select %p178_p1, %s591_s28, %s180_s9  }
   0xb   : > { %p681_p5 = por %p191_p2, %p190_p0  ;;  %p685_p6 = por %p197_p4, %p196_p3 }
   0xc   : > { %p463_p7 = scmp.ge.s32.totalorder %s595_s29, 1  ;;  %p241_p8 = scmp.lt.s32.totalorder %s595_s29, 3 }
   0xe   : > { %p242_p9 = pnand %p463_p7, %p241_p8 }
   0xf   : > { %p273_p10 = scmp.lt.s32.totalorder (!%p242_p9), %s664_s6, 1  ;;  %vm282_vm0 = vcmask (!%p242_p9), 1043456   ;;  %v319_v5 = vld [vmem:[%s777_s5] sm:$0xf] (!%p242_p9)  ;;  %v597_v6 = vmov (!%p242_p9), 0   ;;  %vm291_vm1 = vcmask (!%p242_p9), 11264   ;;  %v303_v15 = vlaneseq (!%p242_p9) }
  0x10   : > { %245 = sbr.rel (%p242_p9) target bundleno = 519 (0x207), region = 48  ;;  %518 = vset.pattern.permute.xlu1 (!%p242_p9), %v597_v6  ;;  %519 = vset.pattern.permute.xlu0 (!%p242_p9), %v597_v6  ;;  %v289_v7 = vld [vmem:[%s773_s1] sm:$0xf] (!%p242_p9)  ;;  %v598_v35 = vmov (!%p242_p9), 839922192   ;;  %s476_s17 = sshll.u32 (!%p242_p9), %s664_s6, 7 }
  0x11   : > { %322 = vperm.xlu1 (!%p242_p9), %518, %v319_v5   ;;  %v304_v18 = vshrl.u32 (!%p242_p9), %v303_v15, 7  ;;  %v299_v19 = vld [vmem:[%s774_s2] sm:$0x1] (!%p242_p9)  ;;  %v325_v36 = vunpack.c.l.s4 (!%p242_p9), %v598_v35  ;;  %s730_s22 = scalar_lea.hbm (!%p242_p9), %s779_s7, %s476_s17  ;;  %s599_s24 = smov (!%p242_p9), [#allocation3]  }
  0x12   : > { %v302_v24 = vld [vmem:[%s775_s3] sm:$0xf] (!%p242_p9)  ;;  %s537_s25 = sshll.u32 (!%p242_p9), %s599_s24, 4  ;;  %s538_s25 = int_to_ptr.vmem [resolvable:$false] %s537_s25 }
  0x13   : > { %v305_v22 = vsub.s32 (!%p242_p9), 0, %v304_v18  ;;  %v311_v28 = vld [vmem:[%s776_s4] sm:$0xf] (!%p242_p9)  ;;  %v326_v37 = vunpack.c.0.s8 (!%p242_p9), %v325_v36  ;;  %s539_s30 = scalar_lea.vmem (!%p242_p9), %s538_s25, 256 }
  0x15   : > { %v329_v38 = vsub.s32 (!%p242_p9), %v326_v37, %v304_v18 }
  0x17   : > { %s274_s14 = scalar_select %p273_p10, %s664_s6, 1 }
  0x19   : > { %s475_s15 = sshll.u32 %s274_s14, 3  ;;  %s350_s14 = sld [smem:[#allocation2]] }
  0x1a   : > { %s277_s18 = scalar_lea.vmem %s772_s0, %s475_s15  ;;  %s270_s15 = sand.u32 1, %s587_s27  }
  0x1b   : > { %v696_v0 = vld [vmem:[%s277_s18] sm:$0xff]  ;;  %s464_s16 = sshll.u32 %s270_s15, 3  ;;  %s387_s23 = scalar_lea.sflag [#allocation4], %s270_s15 }
  0x1c   : > { %v280_v1 = vcombine.high %v696_v0, %v696_v0  ;;  %v283_v2 = vsel %vm282_vm0, %v696_v0, 0.0  ;;  %s272_s18 = scalar_lea.vmem [#allocation3], %s464_s16 }
  0x1d   : > { %s401_s19 = sshll.u32 %s272_s18, 4  ;;  %s732_s19 = int_to_ptr.vmem [resolvable:$true] %s401_s19 }
  0x1e   : > { %v284_v3 = vsel %vm282_vm0, %v280_v1, 0.0  ;;  %s533_s6 = scalar_lea.vmem %s732_s19, 128  ;;  %p540_p0 = scmp.lt.s32.totalorder %s732_s19, %s538_s25 }
  0x1f   : > { %v285_v4 = vadd.f32 %v284_v3, %v283_v2  ;;  %v351_v56 = vstv %s350_s14  ;;  %p534_p11 = scmp.ne.s32.totalorder %s732_s19, %s533_s6  ;;  %p541_p1 = scmp.lt.s32.totalorder %s539_s30, %s533_s6 }
  0x21   : > { %286 = vadd.xlane.f32.xlu0 %v285_v4  ;;  %p535_p12 = pnand %p534_p11, %p681_p5  ;;  %p542_p2 = por %p541_p1, %p540_p0 }
  0x23   : > { %p536_p13 = pneg %p535_p12 }
  0x25   : > { %p543_p3 = pnand %p542_p2, %p536_p13 }
  0x90   : > { %v323_v39 = vpop.permute.xlu1 %322 }
  0x91   : > { %v330_v40 = vrot.slane %v323_v39, %v329_v38 }
  0x93   : > { %v332_v41 = vmul.f32 %v330_v40, %v696_v0 }
  0x95   : > { %v334_v42 = vcombine.high %v332_v41, %v332_v41  ;;  %v336_v43 = vsel %vm282_vm0, %v332_v41, 0.0 }
  0x96   : > { %v337_v45 = vrot.slane %v336_v43, 4 }
  0x97   : > { %v343_v44 = vsel %vm282_vm0, %v334_v42, 0.0 }
  0x98   : > { %v344_v46 = vrot.slane %v343_v44, 4  ;;  %v338_v47 = vadd.f32 %v337_v45, %v336_v43 }
  0x9a   : > { %v345_v48 = vadd.f32 %v344_v46, %v343_v44  ;;  %v339_v49 = vrot.slane %v338_v47, 2 }
  0x9c   : > { %v346_v50 = vrot.slane %v345_v48, 2  ;;  %v340_v51 = vadd.f32 %v339_v49, %v338_v47 }
  0x9e   : > { %v347_v52 = vadd.f32 %v346_v50, %v345_v48  ;;  %v341_v53 = vrot.slane %v340_v51, 1 }
  0xa0   : > { %v348_v54 = vrot.slane %v347_v52, 1  ;;  %v342_v55 = vadd.f32 %v341_v53, %v340_v51 }
  0xa2   : > { %v349_v57 = vadd.f32 %v348_v54, %v347_v52  ;;  %v352_v58 = vadd.f32 %v351_v56, %v342_v55 }
  0xa4   : > { %v353_v59 = vadd.f32 %v351_v56, %v349_v57  ;;  %v468_v60 = vmul.f32 -1.442695, %v352_v58 }
  0xa6   : > { %v469_v61 = vmul.f32 -1.442695, %v353_v59 }
  0xae   : > { %v287_v8 = vpop.xlane.xlu0 %286 }
  0xaf   : > { %v288_v9 = vmul.f32 0.00390625, %v287_v8 }
  0xb1   : > { %v290_v10 = vmul.f32 %v289_v7, %v288_v9 }
  0xb3   : > { %v292_v11 = vsel %vm291_vm1, %v290_v10, 0.0 }
  0xb4   : > { %v293_v12 = vrot.slane %v292_v11, 4 }
  0xb6   : > { %v294_v13 = vadd.f32 %v293_v12, %v292_v11 }
  0xb8   : > { %v295_v14 = vrot.slane %v294_v13, 2 }
  0xba   : > { %v296_v16 = vadd.f32 %v295_v14, %v294_v13 }
  0xbc   : > { %v297_v17 = vrot.slane %v296_v16, 1 }
  0xbe   : > { %v298_v20 = vadd.f32 %v297_v17, %v296_v16 }
  0xc0   : > { %v300_v21 = vadd.f32 %v299_v19, %v298_v20 }
  0xc2   : > { %v301_v23 = vmax.f32 %v300_v21, 0.0 }
  0xc4   : > { %v306_v25 = vrot.slane %v301_v23, %v305_v22 }
  0xc6   : > { %v307_v26 = vmul.f32 %v306_v25, %v302_v24 }
  0xc8   : > { %v308_v27 = vsel %vm291_vm1, %v307_v26, 0.0 }
  0xc9   : > { %309 = vadd.xlane.f32.xlu0 %v308_v27 }
 0x156   : > { %v310_v29 = vpop.xlane.xlu0 %309 }
 0x157   : > { %v312_v30 = vadd.f32 %v311_v28, %v310_v29 }
 0x159   : > { %v467_v31 = vmul.f32 -1.442695, %v312_v30 }
 0x15b   : > { %521 = vpow2.f32 %v467_v31 }
 0x165   : > { %v522_v32 = vpop.eup %521 }
 0x166   : > { %v316_v33 = vadd.f32 1.0, %v522_v32 }
 0x168   : > { %523 = vrcp.f32 %v316_v33 }
 0x169   : > { %525 = vpow2.f32 %v468_v60 }
 0x16a   : > { %527 = vpow2.f32 %v469_v61 }
 0x172   : > { %v524_v34 = vpop.eup %523 }
 0x173   : > { %368 = vperm.xlu1 %518, %v524_v34   ;;  %v526_v62 = vpop.eup %525 }
 0x174   : > { %v528_v63 = vpop.eup %527  ;;  %v360_v1 = vadd.f32 1.0, %v526_v62 }
 0x175   : > { %v361_v2 = vadd.f32 1.0, %v528_v63 }
 0x176   : > { %529 = vrcp.f32 %v360_v1 }
 0x177   : > { %531 = vrcp.f32 %v361_v2 }
 0x180   : > { %v530_v3 = vpop.eup %529 }
 0x181   : > { %v532_v4 = vpop.eup %531 }
 0x182   : > { %v381_v5 = vcombine.low %v530_v3, %v532_v4 }
 0x184   : > { %v383_v8 = vmul.f32 %v381_v5, %v696_v0 }
 0x1f2   : > { %v369_v6 = vpop.permute.xlu1 %368 }
 0x1f3   : > { %v376_v7 = vrot.slane %v369_v6, %v329_v38 }
 0x1f5   : > { %v378_v9 = vmul.f32 %v376_v7, %v696_v0 }
 0x1f7   : > { %v384_v10 = vmax.f32 %v378_v9, %v383_v8 }
 0x1f9   : > { %385 = vst [vmem:[%s272_s18] sm:$0xff] %v384_v10 }
 0x1fa   : > { %546 = shalt.err (!%p543_p3)
}
 0x1fb   : > { %s547_s9 = scalar_lea.hbm %s730_s22, 128  ;;  %s551_s15 = scalar_lea.hbm %s779_s7, 256 }
 0x1fc   : > { %p548_p4 = scmp.ne.s32.totalorder %s730_s22, %s547_s9  ;;  %p552_p9 = scmp.lt.u32.totalorder %s730_s22, %s779_s7 }
 0x1fd   : > { %p553_p10 = scmp.lt.u32.totalorder %s551_s15, %s547_s9  ;;  %p555_p12 = scmp.lt.u32.totalorder %s547_s9, %s730_s22 }
 0x1fe   : > { %p549_p7 = pnand %p548_p4, %p681_p5 }
 0x1ff   : > { %p554_p11 = por %p553_p10, %p552_p9 }
 0x200   : > { %p550_p8 = pneg %p549_p7 }
 0x201   : > { %p556_p13 = por %p555_p12, %p554_p11 }
 0x203   : > { %p557_p0 = pnand %p556_p13, %p550_p8 }
 0x205   : > { %560 = shalt.err (!%p557_p0)
}
 0x206   : > { %477 = dma.vmem_to_hbm [thread:$0]  (%p681_p5), %s732_s19, 128, %s730_s22, %s387_s23  }
 0x207 PF: > { %p483_p1 = scmp.ge.s32.totalorder %s595_s29, 2  ;;  %s413_s18 = sand.u32 1, %s583_s26  }
 0x208   : > { %s414_s20 = scalar_lea.sflag [#allocation4], %s413_s18 }
 0x209   : > { %p480_p2 = pnand %p483_p1, %p685_p6 }
 0x20b   : > { %578 = dma.done.wait (!%p480_p2), %s414_s20, 128  }
 0x20c   : > { %580 = vsyncadd (!%p480_p2), %s414_s20, 4294967168  ;;  %p18_p3 = scmp.ge.s32.totalorder %s668_s8, 4   ;;  %s782_s26 = smov %s587_s27 }
 0x20d   : > { %s783_s27 = smov %s591_s28  ;;  %s784_s28 = smov %s679_s11 }
 0x20e   : > { %s785_s29 = smov %s668_s8  ;;  %20 = sbr.rel (!%p18_p3) target bundleno = 5 (0x5), region = 83 }
 0x215   :  { %419 = vsyncpa [#allocation4], 1 }
 0x216   :  { %421 = vsyncpa [#allocation4 + $0x1], 1 }

</bundles_post_ra>
